<compile_context>
chip_gen: v7x
topology: tpu7x:2x2x1
jax: 0.10.0
libtpu: 0.0.40
codegen_flags: <defaults>
</compile_context>

<pallas_src>
import numpy as np
import jax
import jax.numpy as jnp
from jax.experimental import pallas as pl
from jax.experimental.pallas import tpu as pltpu


_VMEM_BUDGET_BYTES = 10 * 1024 * 1024   # cap for double-buffered in+out tiles
_VMEM_LIMIT_BYTES = 32 * 1024 * 1024    # scoped-VMEM limit (safe on v5e/v6e/v7x)
_LANE_CHUNK = 2048                      # D-axis chunk (multiple of 128)
_MAX_FAST_JUMP = 4                      # read-amplification bound for fast path


def _sublane_pack(dtype):
    itemsize = jnp.dtype(dtype).itemsize
    if itemsize >= 4:
        return 8          # f32/i32 native (8, 128) tile
    return 32 // itemsize  # 16 for bf16/f16, 32 for int8/fp8


def _lane_chunk(D):
    # Full trailing dim if small (allowed even when not 128-aligned), otherwise
    # chunk by a multiple of 128 so blocks stay lane-dense and VMEM-bounded.
    return D if D <= _LANE_CHUNK else _LANE_CHUNK


def _khop_blocked(x3, first, jump, K):
    """Fast path: KB selected rows per grid step, de-strided inside VMEM."""
    B, S, D = (int(d) for d in x3.shape)
    dtype = x3.dtype
    itemsize = jnp.dtype(dtype).itemsize
    pack = _sublane_pack(dtype)

    TD = _lane_chunk(D)
    grid_d = pl.cdiv(D, TD)

    # Selected rows per step: aim for ~1 MiB of input block per batch row,
    # rounded down to the dtype's sublane packing.
    rows_budget = max(1, (1 << 20) // (TD * itemsize))
    KB = max(1, rows_budget // jump)
    KB = max(pack, (KB // pack) * pack)
    if KB >= K:
        # Single block along K (full output extent; allowed regardless of pack).
        KB = K
        need = first + (K - 1) * jump + 1          # input rows actually touched
        SB = min(S, ((need + pack - 1) // pack) * pack)
    else:
        SB = KB * jump                              # multiple of pack, < S
    grid_k = pl.cdiv(K, KB)

    # Batch rows per step: fill the remaining budget (in + out, double-buffered).
    per_b = (SB + KB) * TD * itemsize
    TB = int(max(1, min(B, _VMEM_BUDGET_BYTES // (2 * per_b))))
    if B >= 2 and TB >= B and grid_k == 1 and grid_d == 1:
        TB = (B + 1) // 2    # keep >=2 blocks on a parallel axis (v7x megacore)
    grid_b = pl.cdiv(B, TB)

    def kernel(x_ref, o_ref):
        # One sublane-strided read + one dense block store.
        if jump == 1:
            o_ref[...] = x_ref[:, pl.ds(first, KB), :]
        else:
            o_ref[...] = x_ref[:, pl.ds(first, KB, stride=jump), :]

    return pl.pallas_call(
        kernel,
        out_shape=jax.ShapeDtypeStruct((B, K, D), dtype),
        grid=(grid_b, grid_k, grid_d),
        in_specs=[pl.BlockSpec((TB, SB, TD), lambda b, k, d: (b, k, d))],
        out_specs=pl.BlockSpec((TB, KB, TD), lambda b, k, d: (b, k, d)),
        compiler_params=pltpu.CompilerParams(
            dimension_semantics=("parallel", "parallel", "parallel"),
            vmem_limit_bytes=_VMEM_LIMIT_BYTES,
        ),
    )(x3)


def _khop_per_row(x3, first, jump, K):
    """General path: one selected row per grid step (minimal HBM traffic)."""
    B, S, D = (int(d) for d in x3.shape)
    dtype = x3.dtype
    itemsize = jnp.dtype(dtype).itemsize
    pack = _sublane_pack(dtype)

    TD = _lane_chunk(D)
    grid_d = pl.cdiv(D, TD)

    rows_budget = max(1, _VMEM_BUDGET_BYTES // (2 * 2 * TD * itemsize))
    TB = int(max(1, min(B, rows_budget)))
    if TB < B:
        # dtype-aware sublane rounding, clamped so it never exceeds B.
        TB = min(B, max(pack, (TB // pack) * pack))
    grid_b = pl.cdiv(B, TB)

    def kernel(x_ref, o_ref):
        o_ref[...] = x_ref[...]

    return pl.pallas_call(
        kernel,
        out_shape=jax.ShapeDtypeStruct((B, K, D), dtype),
        grid=(grid_b, K, grid_d),
        in_specs=[
            # Squeezed S dim: only the selected row is DMA'd per step; the row
            # index first + k*jump is computed statically in the index_map.
            pl.BlockSpec((TB, None, TD), lambda b, k, d: (b, first + k * jump, d)),
        ],
        out_specs=pl.BlockSpec((TB, None, TD), lambda b, k, d: (b, k, d)),
        compiler_params=pltpu.CompilerParams(
            dimension_semantics=("parallel", "parallel", "parallel"),
            vmem_limit_bytes=_VMEM_LIMIT_BYTES,
        ),
    )(x3)


def khop_select_axis1(x, select, jump):
    """Pallas equivalent of `x[:, select - 1::jump]` for x of rank >= 2."""
    orig_shape = x.shape
    B, S = int(orig_shape[0]), int(orig_shape[1])
    rest = tuple(int(d) for d in orig_shape[2:])
    D = int(np.prod(rest)) if rest else 1

    # Python/PyTorch slice semantics (handles negative start, empty result, ...).
    idx_list = list(range(S))[select - 1::jump]
    K = len(idx_list)
    if K == 0 or B == 0 or D == 0:
        return jnp.zeros((B, K) + rest, dtype=x.dtype)
    first = int(idx_list[0])

    x3 = x.reshape(B, S, D)
    itemsize = jnp.dtype(x.dtype).itemsize

    # TODO(synk): extend the strided-de-stride fast path to 16/8-bit dtypes once
    # sublane-strided loads on packed dtypes are validated on all generations.
    if 1 <= jump <= _MAX_FAST_JUMP and 0 <= first < jump and itemsize == 4:
        out = _khop_blocked(x3, first, jump, K)
    else:
        out = _khop_per_row(x3, first, jump, K)
    return out.reshape((B, K) + rest)


class Sampler:
    def __init__(self, name):
        self.name = name


class KHopSampler(Sampler):
    """JAX/Pallas port of the PyTorch KHopSampler module (no parameters)."""

    def __init__(self, jump, select):
        super().__init__(f"khop{jump}-{select}")
        self.jump = jump
        self.select = select
        # Single jit for the whole multi-tensor forward (jump/select static).
        self._forward = jax.jit(
            lambda *tensors: tuple(
                khop_select_axis1(t, self.select, self.jump) for t in tensors
            )
        )

    def __call__(self, *tensors):
        # PyTorch forward returns a lazy generator of tensor[:, select-1::jump];
        # we return a tuple with identical element semantics.
        return self._forward(*tensors)


if __name__ == "__main__":
    key = jax.random.PRNGKey(0)
    k1, k2 = jax.random.split(key)

    # Small shapes consistent with the forward (anything with a dim-1 seq axis).
    B, S = 8, 16
    x = jax.random.normal(k1, (B, S, 128), dtype=jnp.float32)     # [B, S, D]
    y = jax.random.normal(k2, (B, S, 4, 32), dtype=jnp.float32)   # [B, S, H, W]

    # Fast path: select-1 (=1) < jump (=3).
    jump, select = 3, 2
    sampler = KHopSampler(jump=jump, select=select)
    out_x, out_y = sampler(x, y)
    jax.block_until_ready((out_x, out_y))

    ref_x = x[:, select - 1::jump]
    ref_y = y[:, select - 1::jump]
    assert out_x.shape == ref_x.shape and out_x.dtype == ref_x.dtype
    assert out_y.shape == ref_y.shape and out_y.dtype == ref_y.dtype
    np.testing.assert_array_equal(np.asarray(out_x), np.asarray(ref_x))
    np.testing.assert_array_equal(np.asarray(out_y), np.asarray(ref_y))

    # General path: start offset (select-1 = 5) >= jump (= 2).
    sampler2 = KHopSampler(jump=2, select=6)
    (out_w,) = sampler2(x)
    out_w = jax.block_until_ready(out_w)
    ref_w = x[:, 6 - 1::2]
    assert out_w.shape == ref_w.shape
    np.testing.assert_array_equal(np.asarray(out_w), np.asarray(ref_w))

    print("KERNEL_OK")
</pallas_src>

<mosaic_0001>
module attributes {stable_mosaic.version = 11 : i64} {
  func.func @kernel(%arg0: i32, %arg1: i32, %arg2: i32, %arg3: memref<4x16x128xf32, #tpu.memory_space<vmem>>, %arg4: memref<4x5x128xf32, #tpu.memory_space<vmem>>) attributes {dimension_semantics = [#tpu.dimension_semantics<parallel>, #tpu.dimension_semantics<parallel>, #tpu.dimension_semantics<parallel>], iteration_bounds = array<i64: 2, 1, 1>, scalar_prefetch = 0 : i64, scratch_operands = 0 : i64, tpu.core_type = #tpu.core_type<tc>, window_params = [{transform_indices = @transform_0, window_bounds = array<i64: 4, 16, 128>}, {transform_indices = @transform_1, window_bounds = array<i64: 4, 5, 128>}]} {
    %c0 = arith.constant 0 : index
    %c1 = arith.constant 1 : index
    %c0_0 = arith.constant 0 : index
    %0 = tpu.strided_load %arg3[%c0, %c1, %c0_0] {strides = array<i32: 1, 3, 1>} : memref<4x16x128xf32, #tpu.memory_space<vmem>>, vector<4x5x128xf32>
    %c0_1 = arith.constant 0 : index
    %c0_2 = arith.constant 0 : index
    %c0_3 = arith.constant 0 : index
    %1 = vector.load %arg4[%c0_1, %c0_2, %c0_3] : memref<4x5x128xf32, #tpu.memory_space<vmem>>, vector<4x5x128xf32>
    tpu.vector_store %arg4[%c0_1, %c0_2, %c0_3], %0 {strides = array<i32>} : memref<4x5x128xf32, #tpu.memory_space<vmem>>, vector<4x5x128xf32>,
    return
  }
  func.func @transform_0(%arg0: i32, %arg1: i32, %arg2: i32) -> (i32, i32, i32) {
    %c0_i32 = arith.constant 0 : i32
    return %arg0, %arg1, %arg2 : i32, i32, i32
  }
  func.func @transform_1(%arg0: i32, %arg1: i32, %arg2: i32) -> (i32, i32, i32) {
    %c0_i32 = arith.constant 0 : i32
    return %arg0, %arg1, %arg2 : i32, i32, i32
  }
}

module attributes {stable_mosaic.version = 11 : i64} {
  func.func @kernel(%arg0: i32, %arg1: i32, %arg2: i32, %arg3: memref<4x16x128xf32, #tpu.memory_space<vmem>>, %arg4: memref<4x5x128xf32, #tpu.memory_space<vmem>>) attributes {dimension_semantics = [#tpu.dimension_semantics<parallel>, #tpu.dimension_semantics<parallel>, #tpu.dimension_semantics<parallel>], iteration_bounds = array<i64: 2, 1, 1>, scalar_prefetch = 0 : i64, scratch_operands = 0 : i64, tpu.core_type = #tpu.core_type<tc>, window_params = [{transform_indices = @transform_0, window_bounds = array<i64: 4, 16, 128>}, {transform_indices = @transform_1, window_bounds = array<i64: 4, 5, 128>}]} {
    %c0 = arith.constant 0 : index
    %c1 = arith.constant 1 : index
    %c0_0 = arith.constant 0 : index
    %0 = tpu.strided_load %arg3[%c0, %c1, %c0_0] {strides = array<i32: 1, 3, 1>} : memref<4x16x128xf32, #tpu.memory_space<vmem>>, vector<4x5x128xf32>
    %c0_1 = arith.constant 0 : index
    %c0_2 = arith.constant 0 : index
    %c0_3 = arith.constant 0 : index
    %1 = vector.load %arg4[%c0_1, %c0_2, %c0_3] : memref<4x5x128xf32, #tpu.memory_space<vmem>>, vector<4x5x128xf32>
    tpu.vector_store %arg4[%c0_1, %c0_2, %c0_3], %0 {strides = array<i32>} : memref<4x5x128xf32, #tpu.memory_space<vmem>>, vector<4x5x128xf32>,
    return
  }
  func.func @transform_0(%arg0: i32, %arg1: i32, %arg2: i32) -> (i32, i32, i32) {
    %c0_i32 = arith.constant 0 : i32
    return %arg0, %arg1, %arg2 : i32, i32, i32
  }
  func.func @transform_1(%arg0: i32, %arg1: i32, %arg2: i32) -> (i32, i32, i32) {
    %c0_i32 = arith.constant 0 : i32
    return %arg0, %arg1, %arg2 : i32, i32, i32
  }
}

</mosaic_0001>

<bundles_post_ra>
// kernel: _lambda_.3
= control target key start
LH: loop header
LB: loop body
LE: loop exit
PB: predicated region body
PF: predicated region fallthrough
CT: control target
= control target key end

     0   :  { %s369_s6 = smov 0   ;;  %s371_s7 = smov 0   ;;  %s390_s0 = inlined_call_operand.vmem [shape: f32[8,16,128], index: 0, kind: input, shape index: {}]   ;;  %s391_s1 = inlined_call_operand.vmem [shape: f32[8,5,128], index: 1, kind: output, shape index: {}]  }
   0x1   :  { %s373_s8 = smov 0  }
   0x2 LB: > { %s30_s9 = sadd.s32 1, %s353_s7  ;;  %p298_p0 = scmp.ge.s32.totalorder %s357_s8, 1  ;;  %s357_s8 = sphi %s373_s8, %s11_s8   ;;  %s353_s7 = sphi %s371_s7, %s393_s7   ;;  %s349_s6 = sphi %s369_s6, %s392_s6  }
   0x3   : > { %p32_p1 = scmp.ge.s32.totalorder %s30_s9, 2  ;;  %p124_p2 = scmp.lt.s32.totalorder %s357_s8, 3 }
   0x5   : > { %s395_s9 = smov (%p32_p1, %s30_s9), 0  ;;  %p125_p3 = pnand %p298_p0, %p124_p2 }
   0x6   : > { %s299_s10 = sshll.u32 (!%p125_p3), %s349_s6, 2 }
   0x7   : > { %128 = sbr.rel (%p125_p3) target bundleno = 21 (0x15), region = 24  ;;  %p160_p4 = scmp.lt.s32.totalorder (!%p125_p3), %s299_s10, 7 }
   0xe   : > { %s397_s10 = smov (!%p160_p4, %s299_s10), 7 }
   0xf   : > { %s310_s11 = sshll.u32 %s397_s10, 4  ;;  %s303_s12 = sshll.u32 %s397_s10, 3 }
  0x10   : > { %s170_s15 = scalar_lea.vmem %s390_s0, %s310_s11  ;;  %s183_s18 = scalar_lea.vmem %s391_s1, %s303_s12 }
  0x11   : > { %v304_v0 = vld [vmem:[%s170_s15 + $0x1] ss:$3 sm:$0x1f]  ;;  %v305_v1 = vld [vmem:[%s170_s15 + $0x11] ss:$3 sm:$0x1f] }
  0x12   : > { %193 = vst [vmem:[%s183_s18] sm:$0x1f] %v304_v0  ;;  %v306_v2 = vld [vmem:[%s170_s15 + $0x21] ss:$3 sm:$0x1f]  ;;  %194 = vst [vmem:[%s183_s18 + $0x8] sm:$0x1f] %v305_v1 }
  0x13   : > { %v307_v3 = vld [vmem:[%s170_s15 + $0x31] ss:$3 sm:$0x1f]  ;;  %195 = vst [vmem:[%s183_s18 + $0x10] sm:$0x1f] %v306_v2 }
  0x14   : > { %196 = vst [vmem:[%s183_s18 + $0x18] sm:$0x1f] %v307_v3 }
  0x15 PF: > { %s11_s8 = sadd.s32 1, %s357_s8   ;;  %s392_s6 = smov %s353_s7 }
  0x16   : > { %p8_p5 = scmp.ge.s32.totalorder %s11_s8, 4   ;;  %s393_s7 = smov %s395_s9 }
  0x18   :  { %10 = sbr.rel (!%p8_p5) target bundleno = 2 (0x2), region = 58 }

// kernel: _lambda_.2
= control target key start
LH: loop header
LB: loop body
LE: loop exit
PB: predicated region body
PF: predicated region fallthrough
CT: control target
= control target key end

     0   :  { %6 = vsyncpa [#allocation3], 0  ;;  %s593_s0 = inlined_call_operand.hbm [shape: f32[8,16,128], index: 0, kind: input, shape index: {}]   ;;  %s594_s1 = inlined_call_operand.vmem [shape: f32[8,5,128], index: 1, kind: output, shape index: {}]  }
   0x1   :  { %8 = vsyncpa [#allocation3 + $0x1], 0  ;;  %s470_s6 = smov 0   ;;  %s472_s7 = smov 0  }
   0x2   :  { %s474_s8 = smov 0   ;;  %s476_s9 = smov 0  }
   0x3   :  { %s478_s10 = smov 0   ;;  %s480_s11 = smov 0  }
   0x4 LB: > { %s298_s12 = sadd.s32 4294967295, %s455_s11   ;;  %s33_s13 = sadd.s32 1, %s451_s10  ;;  %s455_s11 = sphi %s480_s11, %s14_s11   ;;  %s451_s10 = sphi %s478_s10, %s602_s10   ;;  %s447_s9 = sphi %s476_s9, %s601_s9   ;;  %s443_s8 = sphi %s474_s8, %s600_s8   ;;  %s439_s7 = sphi %s472_s7, %s599_s7   ;;  %s435_s6 = sphi %s470_s6, %s598_s6  }
   0x5   : > { %p35_p0 = scmp.ge.s32.totalorder %s33_s13, 2  ;;  %s44_s14 = sadd.s32 1, %s443_s8 }
   0x6   : > { %p51_p1 = scmp.ne.s32.totalorder %s443_s8, %s439_s7  ;;  %p52_p2 = scmp.eq.s32.totalorder %s455_s11, 0 }
   0x7   : > { %s604_s13 = smov (%p35_p0, %s33_s13), 0  ;;  %p57_p4 = scmp.ne.s32.totalorder %s439_s7, %s435_s6 }
   0x8   : > { %p506_p3 = por %p52_p2, %p51_p1  ;;  %s37_s16 = ssub.s32 %s451_s10, %s604_s13 }
   0x9   : > { %p58_p5 = scmp.eq.s32.totalorder %s298_s12, 0  ;;  %p42_p6 = scmp.eq.s32.totalorder %s37_s16, 0 }
   0xa   : > { %p324_p8 = scmp.lt.s32.totalorder %s455_s11, 2  ;;  %s111_s19 = sand.u32 1, %s443_s8  }
   0xb   : > { %p513_p7 = por %p58_p5, %p57_p4  ;;  %s317_s20 = sshll.u32 %s451_s10, 10 }
   0xc   : > { %s519_s18 = scalar_select %p42_p6, %s443_s8, %s44_s14  }
   0xd   : > { %s302_s21 = sshll.u32 %s111_s19, 6  ;;  %s526_s24 = scalar_lea.hbm %s593_s0, %s317_s20 }
   0xe   : > { %s115_s25 = scalar_lea.vmem [#allocation2], %s302_s21  ;;  %p530_p9 = pnand %p324_p8, %p506_p3 }
   0xf   : > { %s126_s26 = sshll.u32 %s115_s25, 4  ;;  %s536_s28 = scalar_lea.sflag [#allocation3], %s111_s19  ;;  %s534_s26 = int_to_ptr.vmem [resolvable:$true] %s126_s26 }
  0x10   : > { %s375_s29 = scalar_lea.hbm %s526_s24, 1024  ;;  %p377_p11 = pneg %p530_p9 }
  0x11   : > { %p376_p10 = scmp.ne.s32.totalorder %s526_s24, %s375_s29  ;;  %s380_s3 = scalar_lea.hbm %s593_s0, 2048 }
  0x12   : > { %p381_p0 = scmp.lt.u32.totalorder %s526_s24, %s593_s0  ;;  %p382_p1 = scmp.lt.u32.totalorder %s380_s3, %s375_s29 }
  0x13   : > { %p378_p12 = pnand %p377_p11, %p376_p10  ;;  %p384_p3 = scmp.lt.u32.totalorder %s375_s29, %s526_s24 }
  0x14   : > { %p383_p2 = por %p382_p1, %p381_p0 }
  0x15   : > { %p379_p13 = pneg %p378_p12 }
  0x16   : > { %p385_p4 = por %p384_p3, %p383_p2 }
  0x18   : > { %p386_p5 = pnand %p385_p4, %p379_p13 }
  0x1a   : > { %389 = shalt.err (!%p386_p5)
}
  0x1b   : > { %s390_s6 = scalar_lea.vmem %s534_s26, 1024  ;;  %s457_s12 = smov [#allocation2]  }
  0x1c   : > { %p391_p6 = scmp.ne.s32.totalorder %s534_s26, %s390_s6  ;;  %s395_s14 = sshll.u32 %s457_s12, 4  ;;  %s396_s14 = int_to_ptr.vmem [resolvable:$false] %s395_s14 }
  0x1d   : > { %s397_s15 = scalar_lea.vmem %s396_s14, 2048  ;;  %p398_p12 = scmp.lt.s32.totalorder %s534_s26, %s396_s14 }
  0x1e   : > { %p393_p8 = pnand %p391_p6, %p377_p11  ;;  %p399_p0 = scmp.lt.s32.totalorder %s397_s15, %s390_s6 }
  0x20   : > { %p394_p10 = pneg %p393_p8  ;;  %p400_p1 = por %p399_p0, %p398_p12 }
  0x22   : > { %p401_p2 = pnand %p400_p1, %p394_p10 }
  0x24   : > { %404 = shalt.err (!%p401_p2)
}
  0x25   : > { %s458_s16 = smov 128   ;;  %s459_s19 = smov 8  }
  0x26   : > { %323 = dma.hbm_to_vmem [thread:$0]  (!%p530_p9), %s526_s24, 1024, %s534_s26, %s536_s28, %s458_s16, %s458_s16, %s459_s19  }
  0x27   : > { %p306_p11 = scmp.ge.s32.totalorder %s455_s11, 1  ;;  %p134_p13 = scmp.lt.s32.totalorder %s455_s11, 3 }
  0x29   : > { %p135_p3 = pnand %p306_p11, %p134_p13 }
  0x2a   : > { %s140_s20 = sand.u32 (!%p135_p3), 1, %s439_s7  }
  0x2b   : > { %138 = sbr.rel (%p135_p3) target bundleno = 59 (0x3b), region = 24  ;;  %s307_s21 = sshll.u32 (!%p135_p3), %s140_s20, 6 }
  0x2c   : > { %s141_s22 = scalar_lea.sflag (!%p135_p3), [#allocation3], %s140_s20  ;;  %s144_s23 = scalar_lea.vmem (!%p135_p3), [#allocation2], %s307_s21 }
  0x32   : > { %430 = dma.done.wait (%p513_p7), %s141_s22, 1024  }
  0x33   : > { %432 = vsyncadd (%p513_p7), %s141_s22, 4294966272  ;;  %s308_s25 = sshll.u32 %s447_s9, 2  ;;  %v310_v0 = vld [vmem:[%s144_s23 + $0x1] ss:$3 sm:$0x1f] }
  0x34   : > { %p172_p4 = scmp.lt.s32.totalorder %s308_s25, 7  ;;  %v311_v1 = vld [vmem:[%s144_s23 + $0x11] ss:$3 sm:$0x1f] }
  0x35   : > { %v312_v2 = vld [vmem:[%s144_s23 + $0x21] ss:$3 sm:$0x1f]  ;;  %v313_v3 = vld [vmem:[%s144_s23 + $0x31] ss:$3 sm:$0x1f] }
  0x36   : > { %s606_s25 = smov (!%p172_p4, %s308_s25), 7 }
  0x37   : > { %s309_s24 = sshll.u32 %s606_s25, 3 }
  0x38   : > { %s181_s28 = scalar_lea.vmem %s594_s1, %s309_s24 }
  0x39   : > { %191 = vst [vmem:[%s181_s28] sm:$0x1f] %v310_v0  ;;  %192 = vst [vmem:[%s181_s28 + $0x8] sm:$0x1f] %v311_v1 }
  0x3a   : > { %193 = vst [vmem:[%s181_s28 + $0x10] sm:$0x1f] %v312_v2  ;;  %194 = vst [vmem:[%s181_s28 + $0x18] sm:$0x1f] %v313_v3 }
  0x3b PF: > { %s14_s11 = sadd.s32 1, %s455_s11   ;;  %s598_s6 = smov %s439_s7 }
  0x3c   : > { %p11_p7 = scmp.ge.s32.totalorder %s14_s11, 4   ;;  %s599_s7 = smov %s443_s8 }
  0x3d   : > { %s600_s8 = smov %s519_s18  ;;  %s601_s9 = smov %s451_s10 }
  0x3e   : > { %s602_s10 = smov %s604_s13  ;;  %13 = sbr.rel (!%p11_p7) target bundleno = 4 (0x4), region = 68 }
  0x45   :  { %229 = vsyncpa [#allocation3], 1 }
  0x46   :  { %231 = vsyncpa [#allocation3 + $0x1], 1 }

</bundles_post_ra>
